<compile_context>
chip_gen: v7x
topology: tpu7x:2x2x1
jax: 0.10.0
libtpu: 0.0.40
codegen_flags: <defaults>
</compile_context>

<pallas_src>
import functools
from collections import namedtuple

import jax
import jax.numpy as jnp
import numpy as np
from jax.experimental import pallas as pl
from jax.experimental.pallas import tpu as pltpu


_Meta = namedtuple(
    "_Meta",
    ["cin", "cout", "kh", "kw", "sh", "sw", "ph", "pw",
     "hout", "wout", "tr", "r", "win", "kpad", "wpad_cols", "lane_pad",
     "hp", "row_pad", "vmem_limit"],
)


def _make_kernel(kh_taps, tr, stride_h):
    def kernel(x_ref, a_ref, b_ref, o_ref):
        # x_ref: (WIN, Kpad)       bf16  row window for this block (incl. KH-1 halo rows)
        # a_ref: (KH, Kpad, WoC)   bf16  structured conv weight (constant block index)
        # b_ref: (1, WoC)          f32   bias tiled over Wout
        # o_ref: (TR, WoC)         f32   lane-dense output rows
        acc = jnp.zeros(o_ref.shape, jnp.float32)
        for kh in range(kh_taps):                      # static unroll over KH taps
            if stride_h == 1:
                rows = x_ref[pl.ds(kh, tr), :]
            else:
                # NOTE: strided sublane read of packed bf16 rows (stride_h > 1 only).
                rows = x_ref[pl.ds(kh, tr, stride_h), :]
            acc = acc + jnp.dot(rows, a_ref[kh], preferred_element_type=jnp.float32)
        acc = acc + b_ref[...]
        o_ref[...] = jnp.maximum(acc, 0.0).astype(o_ref.dtype)
    return kernel


def _forward(x_nchw, A, b_row, m):
    """Jitted per-call path: layout glue + one pallas_call (weights pre-built)."""
    N = x_nchw.shape[0]
    woc = m.wout * m.cout

    # --- prologue (single jit: XLA fuses transpose + pad + cast) ---------------
    x = jnp.transpose(x_nchw, (0, 2, 3, 1))                       # NCHW -> NHWC
    x = jnp.pad(x, ((0, 0),
                    (m.ph, m.ph + m.row_pad),
                    (m.pw, m.pw + m.wpad_cols),
                    (0, 0)))
    xp = x.astype(jnp.bfloat16).reshape(N, m.hp + m.row_pad, -1)  # flatten (W, Cin)
    if m.lane_pad:
        xp = jnp.pad(xp, ((0, 0), (0, 0), (0, m.lane_pad)))       # lane pad -> Kpad

    # Per-row-block halo windows: VMEM footprint scales with TR, not with H.
    if m.r == 1:
        xw = xp[:, : m.win][:, None]                              # (N, 1, WIN, Kpad)
    else:
        xw = jnp.stack(
            [xp[:, rb * m.tr * m.sh: rb * m.tr * m.sh + m.win] for rb in range(m.r)],
            axis=1)                                               # (N, R, WIN, Kpad)

    # True conv FLOPs (structural zeros excluded) + one read of each operand.
    flops = 2 * N * m.hout * m.wout * m.cout * m.kh * m.kw * m.cin
    bytes_accessed = int(xw.size * 2 + A.size * 2 + b_row.size * 4
                         + N * m.r * m.tr * woc * 4)

    out = pl.pallas_call(
        _make_kernel(m.kh, m.tr, m.sh),
        out_shape=jax.ShapeDtypeStruct((N, m.r * m.tr, woc), jnp.float32),
        grid=(N, m.r),
        in_specs=[
            pl.BlockSpec((None, None, m.win, m.kpad), lambda n, rb: (n, rb, 0, 0)),
            # A / bias have constant block indices -> DMA'd once, not per step.
            pl.BlockSpec((m.kh, m.kpad, woc), lambda n, rb: (0, 0, 0)),
            pl.BlockSpec((1, woc), lambda n, rb: (0, 0)),
        ],
        out_specs=pl.BlockSpec((None, m.tr, woc), lambda n, rb: (n, rb, 0)),
        compiler_params=pltpu.CompilerParams(
            dimension_semantics=("parallel", "parallel"),
            vmem_limit_bytes=m.vmem_limit),
        cost_estimate=pl.CostEstimate(flops=flops, transcendentals=0,
                                      bytes_accessed=bytes_accessed),
    )(xw, A, b_row)

    # --- epilogue: back to module semantics (NCHW, input dtype) ----------------
    # (Keeping NHWC downstream would remove this transpose entirely.)
    if m.r * m.tr > m.hout:
        out = out[:, : m.hout]
    out = out.reshape(N, m.hout, m.wout, m.cout)
    out = jnp.transpose(out, (0, 3, 1, 2))
    return out.astype(x_nchw.dtype)


class PallasConvModule:
    """ConvModule default config: y = ReLU(Conv2d(x, W, b)), zero padding, NCHW."""

    def __init__(self, weight_oihw, bias, *, stride=1, padding=1):
        w = np.asarray(weight_oihw, dtype=np.float32)
        assert w.ndim == 4
        self.cout, self.cin, self.kh, self.kw = w.shape
        self.weight = w
        self.bias = np.asarray(bias, dtype=np.float32).reshape(self.cout)
        self.sh = self.sw = int(stride)
        self.ph = self.pw = int(padding)
        self._cache = {}      # (N, H, W) -> (A_bf16, bias_row, jitted forward)

    # -- one-time (per input size) weight restructuring, hoisted off the hot path
    def _prepare(self, n_batch, h, w_in):
        key = (n_batch, h, w_in)
        hit = self._cache.get(key)
        if hit is not None:
            return hit

        cin, cout, kh, kw = self.cin, self.cout, self.kh, self.kw
        sh, sw, ph, pw = self.sh, self.sw, self.ph, self.pw
        hp, wp = h + 2 * ph, w_in + 2 * pw
        hout = (hp - kh) // sh + 1
        wout = (wp - kw) // sw + 1
        woc = wout * cout

        # Row tiling: whole image when it fits, <=128 rows per block otherwise.
        tr = min(hout, 128)
        if n_batch == 1 and tr == hout and hout > 16:
            half = -(-hout // 2)
            half = -(-half // 16) * 16            # bf16-sublane-aligned split (v7x 2 TCs)
            if half < hout:
                tr = half
        r = -(-hout // tr)
        win = (tr - 1) * sh + kh                  # rows per block incl. halo

        # Pad the flattened (W, Cin) lane dim up to a multiple of 128; fold it into
        # the zero W-padding when possible so the prologue stays a single pad.
        wpc = wp * cin
        kpad = max(128, -(-wpc // 128) * 128)
        lane_extra = kpad - wpc
        if lane_extra % cin == 0:
            wpad_cols, lane_pad = lane_extra // cin, 0
        else:
            wpad_cols, lane_pad = 0, lane_extra

        row_pad = max(0, sh * (r * tr - 1) + kh - hp)

        # Structured weight: A[kh, (w*sW + kw)*Cin + c, w*Cout + o] = W[o, c, kh, kw].
        wT = self.weight.transpose(2, 3, 1, 0)                 # (KH, KW, Cin, Cout)
        A = np.zeros((kh, kpad, wout, cout), np.float32)
        for ikh in range(kh):
            for ikw in range(kw):
                for iw in range(wout):
                    c0 = (iw * sw + ikw) * cin
                    A[ikh, c0:c0 + cin, iw, :] = wT[ikh, ikw]
        A = jnp.asarray(A.reshape(kh, kpad, woc), dtype=jnp.bfloat16)
        b_row = jnp.asarray(np.tile(self.bias, wout).reshape(1, woc),
                            dtype=jnp.float32)

        # VMEM budget from the actual (double-buffered) block sizes + headroom.
        need = (2 * (win * kpad * 2 + kh * kpad * woc * 2 + 4096 + tr * woc * 4)
                + 2 * tr * woc * 4)
        vmem_limit = int(min(max(4 * need, 4 << 20), 64 << 20))

        m = _Meta(cin, cout, kh, kw, sh, sw, ph, pw, hout, wout, tr, r, win,
                  kpad, wpad_cols, lane_pad, hp, row_pad, vmem_limit)
        fwd = jax.jit(functools.partial(_forward, m=m))
        prepared = (A, b_row, fwd)
        self._cache[key] = prepared
        return prepared

    def __call__(self, x_nchw):
        n, cin, h, w_in = x_nchw.shape
        assert cin == self.cin
        A, b_row, fwd = self._prepare(n, h, w_in)
        return fwd(x_nchw, A, b_row)


if __name__ == "__main__":
    # ConvModule(in_channels=4, out_channels=8, kernel_size=3, stride=1, padding=1)
    N, Cin, H, W = 2, 4, 16, 16
    Cout, KH, KW = 8, 3, 3

    key = jax.random.PRNGKey(0)
    kx, kw_, kb = jax.random.split(key, 3)

    x = jax.random.normal(kx, (N, Cin, H, W), dtype=jnp.float32)
    fan_out = Cout * KH * KW
    std = float(np.sqrt(2.0 / fan_out))        # kaiming-normal (fan_out, ReLU gain)
    weight = jax.random.normal(kw_, (Cout, Cin, KH, KW), dtype=jnp.float32) * std
    bias = 0.1 * jax.random.normal(kb, (Cout,), dtype=jnp.float32)

    mod = PallasConvModule(weight, bias, stride=1, padding=1)
    y = jax.block_until_ready(mod(x))
    assert y.shape == (N, Cout, H, W), y.shape

    # Second call: reuses the cached A / bias / compiled forward (hoisted prep).
    y2 = jax.block_until_ready(mod(x))
    np.testing.assert_array_equal(np.asarray(y), np.asarray(y2))

    # Reference 1: plain f32 XLA conv + bias + ReLU (module semantics; the kernel
    # feeds the MXU bf16, hence the looser tolerance here).
    ref = jax.lax.conv_general_dilated(
        x, weight, window_strides=(1, 1), padding=((1, 1), (1, 1)),
        dimension_numbers=("NCHW", "OIHW", "NCHW"))
    ref = jnp.maximum(ref + bias[None, :, None, None], 0.0)
    np.testing.assert_allclose(np.asarray(y), np.asarray(ref), rtol=5e-2, atol=3e-2)

    # Reference 2: bf16-rounded operands + f32 accumulation, matching the kernel's
    # numerics (bf16 MXU operands, f32 accumulator) -> tight check.
    xb = x.astype(jnp.bfloat16).astype(jnp.float32)
    wb = weight.astype(jnp.bfloat16).astype(jnp.float32)
    ref2 = jax.lax.conv_general_dilated(
        xb, wb, window_strides=(1, 1), padding=((1, 1), (1, 1)),
        dimension_numbers=("NCHW", "OIHW", "NCHW"),
        precision=jax.lax.Precision.HIGHEST)
    ref2 = jnp.maximum(ref2 + bias[None, :, None, None], 0.0)
    np.testing.assert_allclose(np.asarray(y), np.asarray(ref2), rtol=2e-3, atol=2e-3)

    print("KERNEL_OK")
</pallas_src>

<mosaic_0001>
module attributes {stable_mosaic.version = 11 : i64} {
  func.func @kernel(%arg0: i32, %arg1: i32, %arg2: memref<1x1x18x128xbf16, #tpu.memory_space<vmem>>, %arg3: memref<3x128x128xbf16, #tpu.memory_space<vmem>>, %arg4: memref<1x128xf32, #tpu.memory_space<vmem>>, %arg5: memref<1x16x128xf32, #tpu.memory_space<vmem>>) attributes {dimension_semantics = [#tpu.dimension_semantics<parallel>, #tpu.dimension_semantics<parallel>], iteration_bounds = array<i64: 2, 1>, scalar_prefetch = 0 : i64, scratch_operands = 0 : i64, tpu.core_type = #tpu.core_type<tc>, window_params = [{transform_indices = @transform_0, window_bounds = array<i64: 1, 1, 18, 128>}, {pipeline_mode = #tpu.pipeline_mode<synchronous>, transform_indices = @transform_1, window_bounds = array<i64: 3, 128, 128>}, {pipeline_mode = #tpu.pipeline_mode<synchronous>, transform_indices = @transform_2, window_bounds = array<i64: 1, 128>}, {transform_indices = @transform_3, window_bounds = array<i64: 1, 16, 128>}]} {
    %cst = arith.constant 0.000000e+00 : f32
    %0 = vector.broadcast %cst : f32 to vector<16x128xf32>
    %c0 = arith.constant 0 : index
    %c0_0 = arith.constant 0 : index
    %c0_1 = arith.constant 0 : index
    %c0_2 = arith.constant 0 : index
    %1 = vector.load %arg2[%c0, %c0_0, %c0_1, %c0_2] : memref<1x1x18x128xbf16, #tpu.memory_space<vmem>>, vector<1x1x16x128xbf16>
    %2 = vector.shape_cast %1 : vector<1x1x16x128xbf16> to vector<16x128xbf16>
    %c0_3 = arith.constant 0 : index
    %c0_4 = arith.constant 0 : index
    %c0_5 = arith.constant 0 : index
    %3 = vector.load %arg3[%c0_3, %c0_4, %c0_5] : memref<3x128x128xbf16, #tpu.memory_space<vmem>>, vector<1x128x128xbf16>
    %4 = vector.shape_cast %3 : vector<1x128x128xbf16> to vector<128x128xbf16>
    %cst_6 = arith.constant dense<0.000000e+00> : vector<16x128xf32>
    %5 = tpu.matmul %2, %4, %cst_6 {dimension_numbers = #tpu.dot_dimension_numbers<[1], [0], [0], [1], [0, 0, 1, 1], [], []>} : vector<16x128xbf16>, vector<128x128xbf16>, vector<16x128xf32> -> vector<16x128xf32>
    %6 = arith.addf %0, %5 : vector<16x128xf32>
    %c0_7 = arith.constant 0 : index
    %c0_8 = arith.constant 0 : index
    %c1 = arith.constant 1 : index
    %c0_9 = arith.constant 0 : index
    %7 = vector.load %arg2[%c0_7, %c0_8, %c1, %c0_9] : memref<1x1x18x128xbf16, #tpu.memory_space<vmem>>, vector<1x1x16x128xbf16>
    %8 = vector.shape_cast %7 : vector<1x1x16x128xbf16> to vector<16x128xbf16>
    %c1_10 = arith.constant 1 : index
    %c0_11 = arith.constant 0 : index
    %c0_12 = arith.constant 0 : index
    %9 = vector.load %arg3[%c1_10, %c0_11, %c0_12] : memref<3x128x128xbf16, #tpu.memory_space<vmem>>, vector<1x128x128xbf16>
    %10 = vector.shape_cast %9 : vector<1x128x128xbf16> to vector<128x128xbf16>
    %cst_13 = arith.constant dense<0.000000e+00> : vector<16x128xf32>
    %11 = tpu.matmul %8, %10, %cst_13 {dimension_numbers = #tpu.dot_dimension_numbers<[1], [0], [0], [1], [0, 0, 1, 1], [], []>} : vector<16x128xbf16>, vector<128x128xbf16>, vector<16x128xf32> -> vector<16x128xf32>
    %12 = arith.addf %6, %11 : vector<16x128xf32>
    %c0_14 = arith.constant 0 : index
    %c0_15 = arith.constant 0 : index
    %c2 = arith.constant 2 : index
    %c0_16 = arith.constant 0 : index
    %13 = vector.load %arg2[%c0_14, %c0_15, %c2, %c0_16] : memref<1x1x18x128xbf16, #tpu.memory_space<vmem>>, vector<1x1x16x128xbf16>
    %14 = vector.shape_cast %13 : vector<1x1x16x128xbf16> to vector<16x128xbf16>
    %c2_17 = arith.constant 2 : index
    %c0_18 = arith.constant 0 : index
    %c0_19 = arith.constant 0 : index
    %15 = vector.load %arg3[%c2_17, %c0_18, %c0_19] : memref<3x128x128xbf16, #tpu.memory_space<vmem>>, vector<1x128x128xbf16>
    %16 = vector.shape_cast %15 : vector<1x128x128xbf16> to vector<128x128xbf16>
    %cst_20 = arith.constant dense<0.000000e+00> : vector<16x128xf32>
    %17 = tpu.matmul %14, %16, %cst_20 {dimension_numbers = #tpu.dot_dimension_numbers<[1], [0], [0], [1], [0, 0, 1, 1], [], []>} : vector<16x128xbf16>, vector<128x128xbf16>, vector<16x128xf32> -> vector<16x128xf32>
    %18 = arith.addf %12, %17 : vector<16x128xf32>
    %c0_21 = arith.constant 0 : index
    %c0_22 = arith.constant 0 : index
    %19 = vector.load %arg4[%c0_21, %c0_22] : memref<1x128xf32, #tpu.memory_space<vmem>>, vector<1x128xf32>
    %20 = vector.broadcast %19 : vector<1x128xf32> to vector<16x128xf32>
    %21 = arith.addf %18, %20 : vector<16x128xf32>
    %cst_23 = arith.constant 0.000000e+00 : f32
    %22 = vector.broadcast %cst_23 : f32 to vector<16x128xf32>
    %23 = arith.maximumf %21, %22 : vector<16x128xf32>
    %c0_24 = arith.constant 0 : index
    %c0_25 = arith.constant 0 : index
    %c0_26 = arith.constant 0 : index
    %24 = vector.load %arg5[%c0_24, %c0_25, %c0_26] : memref<1x16x128xf32, #tpu.memory_space<vmem>>, vector<1x16x128xf32>
    %25 = vector.shape_cast %24 : vector<1x16x128xf32> to vector<16x128xf32>
    %26 = vector.shape_cast %23 : vector<16x128xf32> to vector<1x16x128xf32>
    tpu.vector_store %arg5[%c0_24, %c0_25, %c0_26], %26 {strides = array<i32>} : memref<1x16x128xf32, #tpu.memory_space<vmem>>, vector<1x16x128xf32>,
    return
  }
  func.func @transform_0(%arg0: i32, %arg1: i32) -> (i32, i32, i32, i32) {
    %c0_i32 = arith.constant 0 : i32
    %c0_i32_0 = arith.constant 0 : i32
    %c0_i32_1 = arith.constant 0 : i32
    return %arg0, %arg1, %c0_i32, %c0_i32_0 : i32, i32, i32, i32
  }
  func.func @transform_1(%arg0: i32, %arg1: i32) -> (i32, i32, i32) {
    %c0_i32 = arith.constant 0 : i32
    %c0_i32_0 = arith.constant 0 : i32
    %c0_i32_1 = arith.constant 0 : i32
    %c0_i32_2 = arith.constant 0 : i32
    return %c0_i32, %c0_i32_0, %c0_i32_1 : i32, i32, i32
  }
  func.func @transform_2(%arg0: i32, %arg1: i32) -> (i32, i32) {
    %c0_i32 = arith.constant 0 : i32
    %c0_i32_0 = arith.constant 0 : i32
    %c0_i32_1 = arith.constant 0 : i32
    return %c0_i32, %c0_i32_0 : i32, i32
  }
  func.func @transform_3(%arg0: i32, %arg1: i32) -> (i32, i32, i32) {
    %c0_i32 = arith.constant 0 : i32
    %c0_i32_0 = arith.constant 0 : i32
    return %arg0, %arg1, %c0_i32 : i32, i32, i32
  }
}

</mosaic_0001>

<bundles_post_ra>
// kernel: _forward.1
= control target key start
LH: loop header
LB: loop body
LE: loop exit
PB: predicated region body
PF: predicated region fallthrough
CT: control target
= control target key end

     0   :  { %s924_s12 = smov 0   ;;  %s926_s13 = smov 0   ;;  %s1072_s0 = inlined_call_operand.vmem [shape: bf16[2,1,18,128], index: 0, kind: input, shape index: {}]   ;;  %s1073_s1 = inlined_call_operand.vmem [shape: bf16[3,128,128], index: 1, kind: input, shape index: {}]   ;;  %s1074_s2 = inlined_call_operand.vmem [shape: f32[1,128], index: 2, kind: input, shape index: {}]   ;;  %s1075_s3 = inlined_call_operand.vmem [shape: f32[2,16,128], index: 3, kind: output, shape index: {}]  }
   0x1   :  { %s928_s14 = smov 0  }
   0x2 LB: > { %s25_s15 = sadd.s32 1, %s896_s13  ;;  %p670_p0 = scmp.ge.s32.totalorder %s900_s14, 1  ;;  %s900_s14 = sphi %s928_s14, %s13_s14   ;;  %s896_s13 = sphi %s926_s13, %s1077_s13   ;;  %s892_s12 = sphi %s924_s12, %s1076_s12  }
   0x3   : > { %p27_p1 = scmp.ge.s32.totalorder %s25_s15, 2  ;;  %p157_p2 = scmp.lt.s32.totalorder %s900_s14, 3 }
   0x5   : > { %s1079_s15 = smov (%p27_p1, %s25_s15), 0  ;;  %p158_p3 = pnand %p670_p0, %p157_p2 }
   0x6   : > { %v851_v0 = vld [vmem:[%s1073_s1 + $0x40] sm:$0xff] (!%p158_p3)   ;;  %v902_v1 = vmov (!%p158_p3), 0.0   ;;  %v853_v3 = vld [vmem:[%s1073_s1 + $0x48] sm:$0xff] (!%p158_p3)   ;;  %vm903_vm0 = vmmov (!%p158_p3), 0   ;;  %p189_p4 = scmp.lt.s32.totalorder (!%p158_p3), %s892_s12, 1  ;;  %v855_v5 = vld [vmem:[%s1073_s1 + $0x50] sm:$0xff] (!%p158_p3)  }
   0x7   : > { %161 = sbr.rel (%p158_p3) target bundleno = 292 (0x124), region = 32  ;;  %764 = vmatprep.subr.bf16.mxu0 (!%p158_p3), %v902_v1  ;;  %784 = vmatprep.subr.bf16.mxu1 (!%p158_p3), %v902_v1  ;;  %v852_v2 = vld [vmem:[%s1073_s1] sm:$0xff] (!%p158_p3)   ;;  %v854_v4 = vld [vmem:[%s1073_s1 + $0x8] sm:$0xff] (!%p158_p3)   ;;  %v856_v6 = vld [vmem:[%s1073_s1 + $0x10] sm:$0xff] (!%p158_p3)   ;;  %vm253_vm1 = vsmask.f32 (!%p158_p3), 7424 }
   0x8   : > { %765 = vmatpush3.bf16.msra.mxu0 (!%p158_p3), %v851_v0  ;;  %780 = vmatprep.mubr.msk.bf16.mxu0 (!%p158_p3), %vm903_vm0, %v902_v1  ;;  %v857_v7 = vld [vmem:[%s1073_s1 + $0x58] sm:$0xff] (!%p158_p3)   ;;  %v859_v9 = vld [vmem:[%s1073_s1 + $0x60] sm:$0xff] (!%p158_p3)   ;;  %v861_v13 = vld [vmem:[%s1073_s1 + $0x68] sm:$0xff] (!%p158_p3)   ;;  %vm467_vm2 = vcmask (!%p158_p3), 1046528  }
   0x9   : > { %785 = vmatpush3.bf16.msra.mxu1 (!%p158_p3), %v852_v2  ;;  %766 = vmatprep.subr.bf16.mxu0 (!%p158_p3), %v902_v1  ;;  %v858_v8 = vld [vmem:[%s1073_s1 + $0x18] sm:$0xff] (!%p158_p3)   ;;  %v860_v10 = vld [vmem:[%s1073_s1 + $0x20] sm:$0xff] (!%p158_p3)   ;;  %v862_v16 = vld [vmem:[%s1073_s1 + $0x28] sm:$0xff] (!%p158_p3)  }
   0xa   : > { %786 = vmatprep.subr.bf16.mxu1 (!%p158_p3), %v902_v1  ;;  %800 = vmatprep.mubr.msk.bf16.mxu1 (!%p158_p3), %vm903_vm0, %v902_v1  ;;  %v863_v18 = vld [vmem:[%s1073_s1 + $0x70] sm:$0xff] (!%p158_p3)   ;;  %v865_v23 = vld [vmem:[%s1073_s1 + $0x78] sm:$0xff] (!%p158_p3)   ;;  %v869_v28 = vld [vmem:[%s1073_s1 + $0x80] sm:$0xff] (!%p158_p3)  }
   0xb   : > { %v864_v22 = vld [vmem:[%s1073_s1 + $0x30] sm:$0xff] (!%p158_p3)   ;;  %v866_v26 = vld [vmem:[%s1073_s1 + $0x38] sm:$0xff] (!%p158_p3)   ;;  %v870_v29 = vld [vmem:[%s1073_s1 + $0x88] sm:$0xff] (!%p158_p3)  }
   0xc   : > { %767 = vmatpush3.bf16.msra.mxu0 (!%p158_p3), %v853_v3  ;;  %v871_v30 = vld [vmem:[%s1073_s1 + $0x90] sm:$0xff] (!%p158_p3)   ;;  %v872_v31 = vld [vmem:[%s1073_s1 + $0x98] sm:$0xff] (!%p158_p3)   ;;  %v873_v32 = vld [vmem:[%s1073_s1 + $0xa0] sm:$0xff] (!%p158_p3)  }
   0xd   : > { %787 = vmatpush3.bf16.msra.mxu1 (!%p158_p3), %v854_v4  ;;  %768 = vmatprep.subr.bf16.mxu0 (!%p158_p3), %v902_v1  ;;  %v874_v33 = vld [vmem:[%s1073_s1 + $0xa8] sm:$0xff] (!%p158_p3)   ;;  %v875_v35 = vld [vmem:[%s1073_s1 + $0xb0] sm:$0xff] (!%p158_p3)   ;;  %v876_v37 = vld [vmem:[%s1073_s1 + $0xb8] sm:$0xff] (!%p158_p3)  }
   0xe   : > { %s1081_s12 = smov (!%p189_p4, %s892_s12), 1  ;;  %788 = vmatprep.subr.bf16.mxu1 %v902_v1  ;;  %v733_v52 = vld [vmem:[%s1074_s2] ss:$0 sm:$0xff] }
   0xf   : > { %s824_s28 = smul.u32 12, %s1081_s12  ;;  %s736_s24 = sshll.u32 %s1081_s12, 4 }
  0x10   : > { %769 = vmatpush3.bf16.msra.mxu0 %v855_v5  ;;  %s206_s27 = scalar_lea.vmem %s1075_s3, %s736_s24 }
  0x11   : > { %789 = vmatpush3.bf16.msra.mxu1 %v856_v6  ;;  %770 = vmatprep.subr.bf16.mxu0 %v902_v1  ;;  %s984_s8 = scalar_lea.vmem %s1072_s0, %s824_s28 }
  0x12   : > { %790 = vmatprep.subr.bf16.mxu1 %v902_v1  ;;  %v209_v11 = vld [vmem:[%s984_s8] sm:$0xf]  ;;  %v210_v12 = vld [vmem:[%s984_s8 + $0x4] sm:$0xf] }
  0x13   : > { %v690_v14 = vcombine.low %v209_v11, %v210_v12  ;;  %v868_v15 = vld [vmem:[%s984_s8 + $0x8] ss:$0 sps:$4 sm:$0x11]   ;;  %v446_v34 = vld [vmem:[%s984_s8] sm:$0xe] }
  0x14   : > { %771 = vmatpush3.bf16.msra.mxu0 %v857_v7  ;;  %v262_v21 = vshll.u32 %v868_v15, 16  ;;  %v724_v36 = vcombine.low %v446_v34, %v210_v12  ;;  %v469_v39 = vrot.slane %v868_v15, 1 }
  0x15   : > { %791 = vmatpush3.bf16.msra.mxu1 %v858_v8  ;;  %772 = vmatprep.subr.bf16.mxu0 %v902_v1  ;;  %v257_v17 = vshll.u32 %v690_v14, 16  ;;  %v255_v19 = vshrl.u32 %v690_v14, 16 }
  0x16   : > { %792 = vmatprep.subr.bf16.mxu1 %v902_v1  ;;  %v264_v25 = vrot.slane %v262_v21, 1  ;;  %v468_v38 = vrot.slane %v724_v36, 1 }
  0x17   : > { %v259_v20 = vrot.slane %v257_v17, 1 }
  0x18   : > { %773 = vmatpush3.bf16.msra.mxu0 %v859_v9  ;;  %v470_v40 = vsel %vm467_vm2, %v468_v38, %v469_v39 }
  0x19   : > { %793 = vmatpush3.bf16.msra.mxu1 %v860_v10  ;;  %774 = vmatprep.subr.bf16.mxu0 %v902_v1  ;;  %v260_v24 = vor.u32 %v259_v20, %v255_v19 }
  0x1a   : > { %794 = vmatprep.subr.bf16.mxu1 %v902_v1 }
  0x1b   : > { %v265_v27 = vsel %vm253_vm1, %v260_v24, %v264_v25 }
  0x1c   : > { %775 = vmatpush3.bf16.msra.mxu0 %v861_v13 }
  0x1d   : > { %795 = vmatpush3.bf16.msra.mxu1 %v862_v16  ;;  %776 = vmatprep.subr.bf16.mxu0 %v902_v1 }
  0x1e   : > { %796 = vmatprep.subr.bf16.mxu1 %v902_v1 }
  0x20   : > { %777 = vmatpush3.bf16.msra.mxu0 %v863_v18 }
  0x21   : > { %797 = vmatpush3.bf16.msra.mxu1 %v864_v22  ;;  %778 = vmatprep.subr.bf16.mxu0 %v902_v1 }
  0x22   : > { %798 = vmatprep.subr.bf16.mxu1 %v902_v1 }
  0x24   : > { %779 = vmatpush3.bf16.msra.mxu0 %v865_v23 }
  0x25   : > { %799 = vmatpush3.bf16.msra.mxu1 %v866_v26  ;;  %804 = vmatprep.subr.bf16.mxu0 %v902_v1 }
  0x27   : > { %781 = vmatmul.mubr.bf16.vlgmr.msra.gmra.mrb[0].mxu0 %v265_v27 }
  0x28   : > { %801 = vmatmul.mubr.bf16.vlgmr.msra.gmra.mrb[0].mxu1 %v690_v14  ;;  %805 = vmatpush3.bf16.msra.mxu0 %v869_v28 }
  0x29   : > { %806 = vmatprep.subr.bf16.mxu0 %v902_v1  ;;  %820 = vmatprep.mubr.msk.bf16.mxu0 %vm903_vm0, %v902_v1 }
  0x2c   : > { %807 = vmatpush3.bf16.msra.mxu0 %v870_v29 }
  0x2d   : > { %808 = vmatprep.subr.bf16.mxu0 %v902_v1 }
  0x30   : > { %809 = vmatpush3.bf16.msra.mxu0 %v871_v30 }
  0x31   : > { %810 = vmatprep.subr.bf16.mxu0 %v902_v1 }
  0x34   : > { %811 = vmatpush3.bf16.msra.mxu0 %v872_v31 }
  0x35   : > { %812 = vmatprep.subr.bf16.mxu0 %v902_v1 }
  0x38   : > { %813 = vmatpush3.bf16.msra.mxu0 %v873_v32 }
  0x39   : > { %814 = vmatprep.subr.bf16.mxu0 %v902_v1 }
  0x3c   : > { %815 = vmatpush3.bf16.msra.mxu0 %v874_v33 }
  0x3d   : > { %816 = vmatprep.subr.bf16.mxu0 %v902_v1 }
  0x40   : > { %817 = vmatpush3.bf16.msra.mxu0 %v875_v35 }
  0x41   : > { %818 = vmatprep.subr.bf16.mxu0 %v902_v1 }
  0x44   : > { %819 = vmatpush3.bf16.msra.mxu0 %v876_v37 }
  0x47   : > { %821 = vmatmul.mubr.bf16.vlgmr.msra.gmra.mrb[4].mxu0 %v470_v40 }
  0xfa   : > { %v349_v41 = vpop.f32.mrb[0].mxu0 }
  0xfb   : > { %v439_v42 = vpop.f32.mrb[0].mxu1  ;;  %v782_v43 = vpop.f32.mrb[1].mxu0 }
  0xfc   : > { %v440_v44 = vadd.f32 %v439_v42, %v349_v41  ;;  %v802_v45 = vpop.f32.mrb[1].mxu1  ;;  %v352_v46 = vpop.f32.mrb[2].mxu0 }
  0xfd   : > { %v442_v47 = vpop.f32.mrb[2].mxu1  ;;  %v783_v48 = vpop.f32.mrb[3].mxu0 }
  0xfe   : > { %v443_v49 = vadd.f32 %v442_v47, %v352_v46  ;;  %v803_v50 = vpop.f32.mrb[3].mxu1 }
 0x11a   : > { %v554_v51 = vpop.f32.mrb[4].mxu0 }
 0x11b   : > { %v561_v53 = vadd.f32 %v554_v51, %v440_v44  ;;  %v822_v54 = vpop.f32.mrb[5].mxu0 }
 0x11c   : > { %v557_v55 = vpop.f32.mrb[6].mxu0 }
 0x11d   : > { %v570_v56 = vadd.f32 %v733_v52, %v561_v53  ;;  %v562_v57 = vadd.f32 %v557_v55, %v443_v49  ;;  %v823_v58 = vpop.f32.mrb[7].mxu0 }
 0x11f   : > { %v572_v59 = vmax.f32 %v570_v56, 0.0  ;;  %v571_v60 = vadd.f32 %v733_v52, %v562_v57 }
 0x121   : > { %574 = vst [vmem:[%s206_s27] sm:$0xff] %v572_v59  ;;  %v573_v61 = vmax.f32 %v571_v60, 0.0 }
 0x123   : > { %575 = vst [vmem:[%s206_s27 + $0x8] sm:$0xff] %v573_v61 }
 0x124 PF: > { %s13_s14 = sadd.s32 1, %s900_s14   ;;  %s1076_s12 = smov %s896_s13 }
 0x125   : > { %p10_p5 = scmp.ge.s32.totalorder %s13_s14, 4   ;;  %s1077_s13 = smov %s1079_s15 }
 0x127   :  { %12 = sbr.rel (!%p10_p5) target bundleno = 2 (0x2), region = 64 }

</bundles_post_ra>
